<compile_context>
chip_gen: v5e
topology: v5e:2x2
jax: 0.10.0
libtpu: 0.0.40
codegen_flags: <defaults>
</compile_context>

<pallas_src>
import jax
import jax.numpy as jnp
from jax import lax
from jax.experimental import pallas as pl
from jax.experimental.pallas import tpu as pltpu

MAX_LEN = 362                                   # fixed: padding_mask(..., max_len=362)
_MASK_PAD = ((MAX_LEN + 127) // 128) * 128      # 384: lane-aligned store width


def _padding_mask_kernel(x_ref, mask_ref):
    """One batch tile: compute sequence lengths and the (lane-padded) padding mask.

    x_ref:    (TB, T, D) float32 in VMEM
    mask_ref: (TB, 1, _MASK_PAD) int8 output (1 = valid timestep, 0 = padding)
    """
    x = x_ref[...]                                            # (TB, T, D)
    T = x.shape[1]

    # all(timepoint == 0)  <=>  max(|timepoint|) == 0   (reduce over feature/lane dim)
    # (If this VPU lane-reduce ever becomes the binding slot on v7x, it can be moved
    #  to the idle MXU as dot(|x|, ones_D) == 0; the DMA stream is the bottleneck here.)
    is_zero = jnp.max(jnp.abs(x), axis=-1) == 0.0             # (TB, T)

    # length = index of first all-zero timepoint, or T if there is none
    t_idx = lax.broadcasted_iota(jnp.int32, is_zero.shape, 1)  # (TB, T)
    lengths = jnp.min(jnp.where(is_zero, t_idx, T), axis=-1,
                      keepdims=True).astype(jnp.int32)         # (TB, 1)

    # padding_mask: 1 where t < length, emitted over a lane-aligned width (384)
    m_idx = lax.broadcasted_iota(jnp.int32, mask_ref.shape, 2)  # (TB, 1, _MASK_PAD)
    mask_ref[...] = (m_idx < lengths[:, :, None]).astype(jnp.int8)


def _choose_batch_tile(B, T, D, itemsize,
                       budget_bytes=12 * 1024 * 1024, min_grid_steps=4):
    """Pick a batch tile TB.

    Uses the *padded* VMEM footprint of a (TB, T, D) block — T rounded up to 8
    sublanes, D rounded up to 128 lanes — so the ~12 MiB per-buffer budget is the
    real one (double-buffered input ~24 MiB + small int8 mask output, all under the
    48 MiB vmem_limit_bytes set below and v7x's 64 MiB physical VMEM).  Also caps
    TB so the grid has at least min(B, min_grid_steps) iterations: gives the DMA
    pipeline something to overlap and lets v7x shard tiles across both TCs.
    """
    t_pad = ((T + 7) // 8) * 8
    d_pad = ((D + 127) // 128) * 128
    per_row = t_pad * d_pad * itemsize
    tb_budget = max(1, budget_bytes // per_row)
    tb_grid = max(1, pl.cdiv(B, min_grid_steps))   # ensures >= min(B, min_grid_steps) steps
    return int(max(1, min(tb_budget, tb_grid, B)))


def model_wrapper_forward(x):
    """Pallas equivalent of ModelWrapper.forward up to (and excluding) the opaque
    inner model call.

    Returns:
      padding_masks: bool  (B, MAX_LEN)
      lengths:       int32 (B,)   (clamped to MAX_LEN, which equals the PyTorch
                                   value whenever T <= 362, as in the real data;
                                   the mask itself is identical even for T > 362)
    """
    B, T, D = x.shape
    TB = _choose_batch_tile(B, T, D, x.dtype.itemsize)
    grid = (pl.cdiv(B, TB),)

    mask_pad = pl.pallas_call(
        _padding_mask_kernel,
        out_shape=jax.ShapeDtypeStruct((B, 1, _MASK_PAD), jnp.int8),
        grid=grid,
        in_specs=[pl.BlockSpec((TB, T, D), lambda i: (i, 0, 0))],
        out_specs=pl.BlockSpec((TB, 1, _MASK_PAD), lambda i: (i, 0, 0)),
        compiler_params=pltpu.CompilerParams(
            dimension_semantics=("parallel",),
            vmem_limit_bytes=48 * 1024 * 1024),
    )(x)

    mask_valid = mask_pad.reshape(B, _MASK_PAD)[:, :MAX_LEN]    # (B, 362) int8
    masks = mask_valid.astype(jnp.bool_)
    lengths = jnp.sum(mask_valid, axis=-1, dtype=jnp.int32)     # fuses with the slice
    return masks, lengths


if __name__ == "__main__":
    key = jax.random.PRNGKey(0)
    B, T, D = 2, 16, 32  # small shapes; real data has T <= MAX_LEN = 362

    x = jax.random.normal(key, (B, T, D), dtype=jnp.float32)
    # Zero out the tail of each sequence so the two batch elements have
    # different lengths (sequence 0 -> length 10, sequence 1 -> length 5).
    true_lengths = jnp.array([10, 5], dtype=jnp.int32)
    t_iota = jnp.arange(T, dtype=jnp.int32)[None, :, None]            # (1, T, 1)
    x = jnp.where(t_iota < true_lengths[:, None, None], x, 0.0)

    masks, lengths = model_wrapper_forward(x)
    jax.block_until_ready((masks, lengths))

    # Reference check (pure JAX, mirrors the PyTorch loop semantics).
    ref_is_zero = jnp.all(x == 0.0, axis=-1)                           # (B, T)
    ref_lengths = jnp.min(
        jnp.where(ref_is_zero, jnp.arange(T, dtype=jnp.int32)[None, :], T), axis=-1
    ).astype(jnp.int32)
    ref_mask = jnp.arange(MAX_LEN, dtype=jnp.int32)[None, :] < ref_lengths[:, None]

    assert masks.shape == (B, MAX_LEN) and masks.dtype == jnp.bool_
    assert lengths.shape == (B,)
    assert bool(jnp.all(lengths == ref_lengths))
    assert bool(jnp.all(masks == ref_mask))

    print("KERNEL_OK")
</pallas_src>

<mosaic_0001>
module attributes {stable_mosaic.version = 11 : i64} {
  func.func @_padding_mask_kernel(%arg0: i32, %arg1: memref<1x16x32xf32, #tpu.memory_space<vmem>>, %arg2: memref<1x1x384xi8, #tpu.memory_space<vmem>>) attributes {dimension_semantics = [#tpu.dimension_semantics<parallel>], iteration_bounds = array<i64: 2>, scalar_prefetch = 0 : i64, scratch_operands = 0 : i64, tpu.core_type = #tpu.core_type<tc>, window_params = [{transform_indices = @transform_0, window_bounds = array<i64: 1, 16, 32>}, {transform_indices = @transform_1, window_bounds = array<i64: 1, 1, 384>}]} {
    %c0 = arith.constant 0 : index
    %c0_0 = arith.constant 0 : index
    %c0_1 = arith.constant 0 : index
    %0 = vector.load %arg1[%c0, %c0_0, %c0_1] : memref<1x16x32xf32, #tpu.memory_space<vmem>>, vector<1x16x32xf32>
    %1 = math.absf %0 : vector<1x16x32xf32>
    %cst = arith.constant dense<0xFF800000> : vector<1x16xf32>
    %2 = vector.multi_reduction <maximumf>, %1, %cst [2] : vector<1x16x32xf32> to vector<1x16xf32>
    %cst_2 = arith.constant 0.000000e+00 : f32
    %3 = vector.broadcast %cst_2 : f32 to vector<1x16xf32>
    %4 = arith.cmpf oeq, %2, %3 : vector<1x16xf32>
    %5 = tpu.iota {dimensions = array<i32: 1>} : vector<1x16xi32>
    %c16_i32 = arith.constant 16 : i32
    %6 = vector.broadcast %c16_i32 : i32 to vector<1x16xi32>
    %7 = arith.select %4, %5, %6 : vector<1x16xi1>, vector<1x16xi32>
    %cst_3 = arith.constant dense<2147483647> : vector<1xi32>
    %8 = vector.multi_reduction <minsi>, %7, %cst_3 [1] : vector<1x16xi32> to vector<1xi32>
    %9 = vector.shape_cast %8 : vector<1xi32> to vector<1x1xi32>
    %10 = tpu.iota {dimensions = array<i32: 2>} : vector<1x1x384xi32>
    %11 = vector.shape_cast %9 : vector<1x1xi32> to vector<1x1x1xi32>
    %12 = vector.broadcast %11 : vector<1x1x1xi32> to vector<1x1x384xi32>
    %13 = arith.cmpi slt, %10, %12 : vector<1x1x384xi32>
    %14 = arith.extui %13 : vector<1x1x384xi1> to vector<1x1x384xi8>
    %c0_4 = arith.constant 0 : index
    %c0_5 = arith.constant 0 : index
    %c0_6 = arith.constant 0 : index
    %15 = vector.load %arg2[%c0_4, %c0_5, %c0_6] : memref<1x1x384xi8, #tpu.memory_space<vmem>>, vector<1x1x384xi8>
    tpu.vector_store %arg2[%c0_4, %c0_5, %c0_6], %14 {strides = array<i32>} : memref<1x1x384xi8, #tpu.memory_space<vmem>>, vector<1x1x384xi8>,
    return
  }
  func.func @transform_0(%arg0: i32) -> (i32, i32, i32) {
    %c0_i32 = arith.constant 0 : i32
    %c0_i32_0 = arith.constant 0 : i32
    %c0_i32_1 = arith.constant 0 : i32
    return %arg0, %c0_i32, %c0_i32_0 : i32, i32, i32
  }
  func.func @transform_1(%arg0: i32) -> (i32, i32, i32) {
    %c0_i32 = arith.constant 0 : i32
    %c0_i32_0 = arith.constant 0 : i32
    %c0_i32_1 = arith.constant 0 : i32
    return %arg0, %c0_i32, %c0_i32_0 : i32, i32, i32
  }
}

</mosaic_0001>

<bundles_post_ra>
// kernel: tpu_custom_call.1
= control target key start
LH: loop header
LB: loop body
LE: loop exit
PB: predicated region body
PF: predicated region fallthrough
CT: control target
= control target key end

     0   :  { %6 = vsyncpa [#allocation3], 0  ;;  %s546_s0 = inlined_call_operand.hbm [shape: f32[2,16,32], index: 0, kind: input, shape index: {}]   ;;  %s547_s1 = inlined_call_operand.vmem [shape: s8[2,1,384], index: 1, kind: output, shape index: {}]  }
   0x1   :  { %8 = vsyncpa [#allocation3 + $0x1], 0  ;;  %s432_s6 = smov 0   ;;  %s434_s7 = smov 0  }
   0x2   :  { %s436_s8 = smov 0   ;;  %s438_s9 = smov 0  }
   0x3 LB: > { %s451_s10 = sadd.s32 4294967295, %s417_s9   ;;  %s454_s11 = sadd.s32 1, %s417_s9   ;;  %s417_s9 = sphi %s438_s9, %s558_s9   ;;  %s413_s8 = sphi %s436_s8, %s557_s8   ;;  %s409_s7 = sphi %s434_s7, %s556_s7   ;;  %s405_s6 = sphi %s432_s6, %s555_s6  }
   0x4   : > { %s18_s12 = ssub.s32 %s417_s9, %s454_s11  ;;  %s21_s13 = sadd.s32 1, %s413_s8 }
   0x5   : > { %p19_p0 = scmp.eq.s32.totalorder %s18_s12, 0  ;;  %p28_p1 = scmp.ne.s32.totalorder %s413_s8, %s409_s7 }
   0x6   : > { %p29_p2 = scmp.eq.s32.totalorder %s417_s9, 0  ;;  %p34_p3 = scmp.ne.s32.totalorder %s409_s7, %s405_s6 }
   0x7   : > { %s464_s14 = scalar_select %p19_p0, %s413_s8, %s21_s13  }
   0x8   : > { %p466_p4 = por %p29_p2, %p28_p1  ;;  %p35_p5 = scmp.eq.s32.totalorder %s451_s10, 0 }
   0x9   : > { %p313_p6 = scmp.lt.s32.totalorder %s417_s9, 2  ;;  %s84_s17 = sand.u32 1, %s413_s8  }
   0xa   : > { %p472_p7 = por %p35_p5, %p34_p3  ;;  %s298_s18 = sshll.u32 %s84_s17, 4 }
   0xb   : > { %s305_s19 = sshll.u32 %s417_s9, 4  ;;  %s88_s23 = scalar_lea.vmem [#allocation2], %s298_s18 }
   0xc   : > { %s93_s22 = scalar_lea.hbm %s546_s0, %s305_s19  ;;  %s96_s24 = sshll.u32 %s88_s23, 4  ;;  %s97_s24 = int_to_ptr.vmem [resolvable:$true] %s96_s24 }
   0xd   : > { %s94_s25 = sshll.u32 %s93_s22, 4  ;;  %p483_p8 = pnand %p313_p6, %p466_p4  ;;  %s95_s25 = int_to_ptr.hbm [resolvable:$true] %s94_s25 }
   0xe   : > { %p301_p9 = scmp.ge.s32.totalorder %s417_s9, 1  ;;  %s85_s27 = scalar_lea.sflag [#allocation3], %s84_s17 }
   0xf   : > { %s353_s28 = sshra.s32 %s95_s25, 4  ;;  %p357_p11 = pneg %p483_p8  ;;  %s354_s28 = int_to_ptr.hbm [resolvable:$true] %s353_s28 }
  0x10   : > { %s355_s29 = scalar_lea.hbm %s354_s28, 16  ;;  %s360_s3 = scalar_lea.hbm %s546_s0, 32 }
  0x11   : > { %p356_p10 = scmp.ne.s32.totalorder %s354_s28, %s355_s29  ;;  %p361_p0 = scmp.lt.s32.totalorder %s354_s28, %s546_s0 }
  0x12   : > { %p362_p1 = scmp.lt.s32.totalorder %s360_s3, %s355_s29 }
  0x13   : > { %p358_p12 = pnand %p357_p11, %p356_p10 }
  0x14   : > { %p363_p2 = por %p362_p1, %p361_p0 }
  0x15   : > { %p359_p13 = pneg %p358_p12 }
  0x17   : > { %p364_p3 = pnand %p363_p2, %p359_p13 }
  0x19   : > { %367 = shalt.err (!%p364_p3)
}
  0x1a   : > { %s419_s6 = smov 128   ;;  %s420_s12 = smov 8  }
  0x1b   : > { %312 = dma.hbm_to_vmem [thread:$0]  (!%p483_p8), %s95_s25, 256, %s97_s24, %s85_s27, %s419_s6, %s419_s6, %s420_s12  }
  0x1c   : > { %p104_p4 = scmp.lt.s32.totalorder %s417_s9, 3 }
  0x1e   : > { %p105_p5 = pnand %p301_p9, %p104_p4 }
  0x1f   : > { %s110_s13 = sand.u32 (!%p105_p5), 1, %s409_s7  }
  0x20   : > { %108 = sbr.rel (%p105_p5) target bundleno = 306 (0x132), region = 24  ;;  %s302_s15 = sshll.u32 (!%p105_p5), %s110_s13, 4 }
  0x21   : > { %s111_s17 = scalar_lea.sflag (!%p105_p5), [#allocation3], %s110_s13  ;;  %s114_s18 = scalar_lea.vmem (!%p105_p5), [#allocation2], %s302_s15 }
  0x25   : > { %400 = dma.done.wait (%p472_p7), %s111_s17, 256  }
  0x26   : > { %402 = vsyncadd (%p472_p7), %s111_s17, 4294967040  ;;  %v152_v0 = vlaneseq  ;;  %v139_v2 = vld [vmem:[%s114_s18] sm:$0xff]  ;;  %vm143_vm0 = vcmask 261120   ;;  %v140_v5 = vld [vmem:[%s114_s18 + $0x8] sm:$0xff]  ;;  %v421_v10 = vmov 0   ;;  %vm168_vm3 = vcmask 7168  }
  0x27   : > { %v141_v4 = vand.u32 2147483647, %v139_v2  ;;  %v142_v7 = vand.u32 2147483647, %v140_v5  ;;  %351 = vset.pattern.permute.xlu2 %v421_v10  ;;  %352 = vset.pattern.permute.xlu0 %v421_v10  ;;  %p133_p6 = scmp.lt.s32.totalorder %s451_s10, 1  ;;  %vm208_vm12 = vcmask 1040384  }
  0x28   : > { %v155_v1 = vshrl.u32 %v152_v0, 7  ;;  %v153_v3 = vand.u32 127, %v152_v0  ;;  %vm217_vm13 = vsmask.f32 0  ;;  %vm219_vm15 = vcmask 1041409  }
  0x29   : > { %v144_v6 = vsel %vm143_vm0, %v141_v4, -inf  ;;  %v147_v9 = vsel %vm143_vm0, %v142_v7, -inf  ;;  %s560_s10 = smov (!%p133_p6, %s451_s10), 1  ;;  %vm220_vm0 = vsmask.f32 1024 }
  0x2a   : > { %349 = vset.pattern.permute.xlu1 %v155_v1  ;;  %145 = vmax.xlane.f32.xlu0 %v144_v6  ;;  %v162_v8 = vadd.s32 8, %v155_v1  ;;  %v182_v26 = vadd.s32 128, %v153_v3  ;;  %v183_v27 = vadd.s32 256, %v153_v3  ;;  %s306_s9 = smul.u32 3, %s560_s10 }
  0x2c   : > { %s136_s10 = scalar_lea.vmem %s547_s1, %s306_s9 }
  0x2d   : > { %v227_v42 = vld [vmem:[%s136_s10] sm:$0x7] }
  0x32   : > { %158 = vperm.xlu1 %349, %v153_v3   ;;  %148 = vmax.xlane.f32.xlu0 %v147_v9 }
  0x3a   : > { %350 = vset.pattern.permute.xlu1 %v162_v8 }
  0x42   : > { %164 = vperm.xlu1 %350, %v153_v3  }
  0x9d   : > { %v146_v11 = vpop.xlane.xlu0 %145 }
  0x9e   : > { %vm150_vm1 = vcmp.eq.f32.partialorder %v146_v11, 0.0 }
  0xa4   : > { %v159_v12 = vpop.permute.xlu1 %158 }
  0xa5   : > { %v149_v13 = vpop.xlane.xlu0 %148  ;;  %v166_v14 = vsel %vm150_vm1, %v159_v12, 16  ;;  %vm513_vm1 = vmand %vm208_vm12, %vm217_vm13 }
  0xa6   : > { %vm151_vm2 = vcmp.eq.f32.partialorder %v149_v13, 0.0  ;;  %v169_v17 = vsel %vm168_vm3, %v166_v14, 2147483647 }
  0xb4   : > { %v165_v15 = vpop.permute.xlu1 %164 }
  0xb5   : > { %v167_v16 = vsel %vm151_vm2, %v165_v15, 16  ;;  %vm517_vm2 = vmand %vm219_vm15, %vm220_vm0 }
  0xb6   : > { %v170_v18 = vsel %vm168_vm3, %v167_v16, 2147483647 }
  0xb7   : > { %vm171_vm4 = vcmp.lt.s32.totalorder %v169_v17, %v170_v18 }
  0xb8   : > { %v172_v19 = vsel %vm171_vm4, %v169_v17, %v170_v18  ;;  %vm223_vm4 = vcmask 1042434  }
  0xb9   : > { %v173_v20 = vrot.slane %v172_v19, 4 }
  0xbb   : > { %vm174_vm5 = vcmp.lt.s32.totalorder %v172_v19, %v173_v20 }
  0xbc   : > { %v175_v21 = vsel %vm174_vm5, %v172_v19, %v173_v20  ;;  %vm224_vm5 = vsmask.f32 2048 }
  0xbd   : > { %v176_v22 = vrot.slane %v175_v21, 2 }
  0xbf   : > { %vm177_vm6 = vcmp.lt.s32.totalorder %v175_v21, %v176_v22 }
  0xc0   : > { %v178_v23 = vsel %vm177_vm6, %v175_v21, %v176_v22  ;;  %vm222_vm6 = vmor %vm517_vm2, %vm513_vm1 }
  0xc1   : > { %v179_v24 = vrot.slane %v178_v23, 1 }
  0xc3   : > { %vm180_vm7 = vcmp.lt.s32.totalorder %v178_v23, %v179_v24 }
  0xc4   : > { %v181_v25 = vsel %vm180_vm7, %v178_v23, %v179_v24  ;;  %vm225_vm7 = vmand %vm223_vm4, %vm224_vm5 }
  0xc5   : > { %185 = vperm.xlu2 %351, %v181_v25   ;;  %vm226_vm13 = vmor %vm225_vm7, %vm222_vm6 }
 0x11f   : > { %v186_v28 = vpop.permute.xlu2 %185 }
 0x120   : > { %vm187_vm8 = vcmp.lt.s32.totalorder %v153_v3, %v186_v28  ;;  %vm188_vm9 = vcmp.lt.s32.totalorder %v182_v26, %v186_v28  ;;  %vm189_vm10 = vcmp.lt.s32.totalorder %v183_v27, %v186_v28 }
 0x121   : > { %vm190_vm11 = vmpackc.low %vm188_vm9, %vm187_vm8 }
 0x122   : > { %vm191_vm14 = vmpackc.low %vm189_vm10, %vm189_vm10  ;;  %v192_v29 = vsel %vm190_vm11, 16711935, %v421_v10  ;;  %vm212_vm11 = vcmask 1041408  }
 0x123   : > { %v193_v30 = vsel %vm191_vm14, 16711935, %v421_v10 }
 0x124   : > { %v194_v31 = vpack.c.b8 %v193_v30, %v192_v29 }
 0x126   : > { %vm195_vm3 = vnez %v194_v31 }
 0x127   : > { %v196_v34 = vsel %vm195_vm3, 16843009, %v421_v10 }
 0x128   : > { %v197_v35 = vperm.slane %v196_v34, 0  ;;  %v198_v36 = vperm.slane %v196_v34, 2  ;;  %v199_v37 = vperm.slane %v196_v34, 4 }
 0x12a   : > { %vm200_vm8 = vnez %v197_v35  ;;  %vm201_vm9 = vnez %v198_v36  ;;  %vm202_vm10 = vnez %v199_v37 }
 0x12b   : > { %v204_v38 = vsel %vm201_vm9, 16843009, %v421_v10  ;;  %v205_v39 = vsel %vm202_vm10, 16843009, %v421_v10  ;;  %v203_v43 = vsel %vm200_vm8, 16843009, %v421_v10 }
 0x12c   : > { %v206_v40 = vrot.slane %v204_v38, 7  ;;  %v207_v41 = vrot.slane %v205_v39, 6 }
 0x12e   : > { %v211_v44 = vsel %vm208_vm12, %v203_v43, %v206_v40 }
 0x12f   : > { %v214_v45 = vsel %vm212_vm11, %v211_v44, %v207_v41 }
 0x130   : > { %v228_v46 = vsel %vm226_vm13, %v214_v45, %v227_v42 }
 0x131   : > { %229 = vst [vmem:[%s136_s10] sm:$0x7] %v228_v46 }
 0x132 PF: > { %p11_p7 = scmp.ge.s32.totalorder %s454_s11, 4   ;;  %s555_s6 = smov %s409_s7 }
 0x133   : > { %s556_s7 = smov %s413_s8  ;;  %s557_s8 = smov %s464_s14 }
 0x134   : > { %s558_s9 = smov %s454_s11  ;;  %13 = sbr.rel (!%p11_p7) target bundleno = 3 (0x3), region = 64 }
 0x139   :  { %249 = vsyncpa [#allocation3], 1 }
 0x13a   :  { %251 = vsyncpa [#allocation3 + $0x1], 1 }

</bundles_post_ra>
